<compile_context>
chip_gen: v5e
topology: v5e:2x2
jax: 0.10.0
libtpu: 0.0.40
codegen_flags: <defaults>
</compile_context>

<pallas_src>
import jax
import jax.numpy as jnp
from jax.experimental import pallas as pl
from jax.experimental.pallas import tpu as pltpu


# ----------------------------------------------------------------------------
# Shared spec helpers.
# ----------------------------------------------------------------------------
def _const_full_spec(a):
    """Full-array block, constant index map, single-buffered (loop-invariant)."""
    nd = a.ndim
    return pl.BlockSpec(a.shape, lambda *_: (0,) * nd,
                        pipeline_mode=pl.Buffered(1))


def _pick_col_tile(n_out):
    if n_out <= 1024:
        return n_out
    for ct in (1024, 512, 256, 128):
        if n_out % ct == 0:
            return ct
    return n_out


# ----------------------------------------------------------------------------
# Clinical conditioning: both MLP3 heads in one kernel, fc3 tiled over columns.
# ----------------------------------------------------------------------------
def _mlp3_pair_kernel(x_ref,
                      hw1, hb1, hw2, hb2, hw3, hb3,
                      mw1, mb1, mw2, mb2, mw3, mb3,
                      h_out, m_out):
    x = x_ref[...]

    def head(w1, b1, w2, b2, w3, b3):
        h = jnp.maximum(
            jnp.dot(x, w1[...], preferred_element_type=jnp.float32) + b1[...], 0.0)
        h = jnp.maximum(
            jnp.dot(h, w2[...], preferred_element_type=jnp.float32) + b2[...], 0.0)
        return jnp.dot(h, w3[...], preferred_element_type=jnp.float32) + b3[...]

    h_out[...] = head(hw1, hb1, hw2, hb2, hw3, hb3)
    m_out[...] = head(mw1, mb1, mw2, mb2, mw3, mb3)


def _mlp3_kernel(x_ref, w1, b1, w2, b2, w3, b3, o_ref):
    x = x_ref[...]
    h = jnp.maximum(
        jnp.dot(x, w1[...], preferred_element_type=jnp.float32) + b1[...], 0.0)
    h = jnp.maximum(
        jnp.dot(h, w2[...], preferred_element_type=jnp.float32) + b2[...], 0.0)
    o_ref[...] = jnp.dot(h, w3[...], preferred_element_type=jnp.float32) + b3[...]


def clinical_embeddings(clinical, mlp_h, mlp_m):
    """Both clinical MLP3 heads, one pallas_call; fc3 column-tiled."""
    B = clinical.shape[0]
    hw1, hb1, hw2, hb2, hw3, hb3 = mlp_h
    mw1, mb1, mw2, mb2, mw3, mb3 = mlp_m
    n_out = hw3.shape[1]
    ct = _pick_col_tile(n_out)
    col = lambda j: (0, j)

    in_specs = ([_const_full_spec(clinical)]
                + [_const_full_spec(a) for a in (hw1, hb1, hw2, hb2)]
                + [pl.BlockSpec((hw3.shape[0], ct), col),
                   pl.BlockSpec((1, ct), col)]
                + [_const_full_spec(a) for a in (mw1, mb1, mw2, mb2)]
                + [pl.BlockSpec((mw3.shape[0], ct), col),
                   pl.BlockSpec((1, ct), col)])
    return pl.pallas_call(
        _mlp3_pair_kernel,
        out_shape=(jax.ShapeDtypeStruct((B, n_out), jnp.float32),
                   jax.ShapeDtypeStruct((B, n_out), jnp.float32)),
        grid=(n_out // ct,),
        in_specs=in_specs,
        out_specs=(pl.BlockSpec((B, ct), col), pl.BlockSpec((B, ct), col)),
        compiler_params=pltpu.CompilerParams(
            dimension_semantics=("parallel",)),
    )(clinical, hw1, hb1, hw2, hb2, hw3, hb3, mw1, mb1, mw2, mb2, mw3, mb3)


def mlp3_pallas(x, mlp):
    w1, b1, w2, b2, w3, b3 = mlp
    B = x.shape[0]
    n_out = w3.shape[1]
    ct = _pick_col_tile(n_out)
    col = lambda j: (0, j)
    return pl.pallas_call(
        _mlp3_kernel,
        out_shape=jax.ShapeDtypeStruct((B, n_out), jnp.float32),
        grid=(n_out // ct,),
        in_specs=([_const_full_spec(x)]
                  + [_const_full_spec(a) for a in (w1, b1, w2, b2)]
                  + [pl.BlockSpec((w3.shape[0], ct), col),
                     pl.BlockSpec((1, ct), col)]),
        out_specs=pl.BlockSpec((B, ct), col),
        compiler_params=pltpu.CompilerParams(
            dimension_semantics=("parallel",)),
    )(x, w1, b1, w2, b2, w3, b3)


# ----------------------------------------------------------------------------
# Decoder kernel: one grid step == one batch TILE (B_TILE batches row-stacked);
# the full autoregressive time loop is statically unrolled inside the kernel.
# ----------------------------------------------------------------------------
def make_decoder_kernel(B_TILE, N, E, Din, H, Ke, T):
    R_n = B_TILE * N
    R_e = B_TILE * E

    def mm(a, w):
        # LHS cast to the weight's dtype (no-op for f32); f32 MXU accumulation.
        return jnp.dot(a.astype(w.dtype), w, preferred_element_type=jnp.float32)

    def kernel(x0_ref, h0_ref, cmsg_ref, rrTw_ref,          # per-tile blocks
               rr_ref, rs_ref,                              # block-diag one-hots
               w1r_ref, w1s_ref, b1_ref, w2_ref, b2_ref,    # msg MLP (per type)
               gwi_ref, gbi_ref, gwh_ref, gbh_ref,          # GRU weights
               wo1_ref, bo1_ref, wo2_ref, bo2_ref, wo3_ref, bo3_ref,
               out_ref):                                    # (R_n, T, Din)
        # ---- loop-invariant loads & bias broadcasts (hoisted once) ----
        rr = rr_ref[...]                                    # (R_e, R_n)
        rs = rs_ref[...]                                    # (R_e, R_n)
        cmsg = cmsg_ref[...]                                # (R_n, H)
        w1r = [w1r_ref[k] for k in range(Ke)]               # each (H, H)
        w1s = [w1s_ref[k] for k in range(Ke)]
        b1 = [jnp.broadcast_to(b1_ref[k], (R_e, H)) for k in range(Ke)]
        w2 = [w2_ref[k] for k in range(Ke)]
        b2 = [jnp.broadcast_to(b2_ref[k], (R_e, H)) for k in range(Ke)]
        rrTw = [rrTw_ref[k] for k in range(Ke)]             # each (R_n, R_e)
        wir, wiz, win = gwi_ref[0], gwi_ref[1], gwi_ref[2]  # (Din, H)
        bir = jnp.broadcast_to(gbi_ref[0], (R_n, H))
        biz = jnp.broadcast_to(gbi_ref[1], (R_n, H))
        bin_ = jnp.broadcast_to(gbi_ref[2], (R_n, H))
        whr, whn = gwh_ref[0], gwh_ref[1]                   # (H, H)
        bhr = jnp.broadcast_to(gbh_ref[0], (R_n, H))
        bhn = jnp.broadcast_to(gbh_ref[1], (R_n, H))
        wo1 = wo1_ref[...]; bo1 = jnp.broadcast_to(bo1_ref[...], (R_n, H))
        wo2 = wo2_ref[...]; bo2 = jnp.broadcast_to(bo2_ref[...], (R_n, H))
        wo3 = wo3_ref[...]; bo3 = jnp.broadcast_to(bo3_ref[...], (R_n, Din))

        x = x0_ref[...]                                     # (R_n, Din)
        hidden = h0_ref[...]                                # (R_n, H)
        out_ref[:, 0:1, :] = x[:, None, :]                  # t = 0 input frame

        # Static unroll over time (T is small & static): cross-step overlap for
        # the LLO scheduler and static output-store offsets.
        for t in range(T - 1):
            # -- message passing (reassociated: per-node weight, then gather) --
            agg = cmsg
            for k in range(Ke):
                pr = mm(hidden, w1r[k])                     # (R_n, H)
                ps = mm(hidden, w1s[k])                     # (R_n, H)
                mk = jnp.maximum(mm(rr, pr) + mm(rs, ps) + b1[k], 0.0)  # (R_e,H)
                mk = jnp.maximum(mm(mk, w2[k]) + b2[k], 0.0)
                # rel_type weighting folded into the aggregation matrix.
                agg = agg + mm(rrTw[k], mk)                 # (R_n, H)

            # -- GRU (unfused gates: H=32 slices would land mid-vreg) --
            hrv = mm(agg, whr) + bhr
            hnv = mm(agg, whn) + bhn
            r = jax.nn.sigmoid(mm(x, wir) + bir + hrv)
            # Faithful to the PyTorch module: z also uses self.hr(agg).
            z = jax.nn.sigmoid(mm(x, wiz) + biz + hrv)
            n = jnp.tanh(mm(x, win) + bin_ + r * hnv)
            hidden = (1.0 - z) * n + z * hidden

            # -- output MLP + residual --
            p = jnp.maximum(mm(hidden, wo1) + bo1, 0.0)
            p = jnp.maximum(mm(p, wo2) + bo2, 0.0)
            p = mm(p, wo3) + bo3
            pred = x + p                                    # (R_n, Din)

            out_ref[:, t + 1:t + 2, :] = pred[:, None, :]
            x = pred

    return kernel


def rnn_decoder_multi_forward(data, rel_type, rel_rec, rel_send, clinical,
                              params, *, cond_hidden=True, cond_msgs=True,
                              skip_first=False, edge_types_list=None,
                              compute_dtype=jnp.float32):
    B, N, T, Din = data.shape
    E = rel_rec.shape[0]
    K = rel_type.shape[-1]
    H = params['hr_w'].shape[0]

    # ---- clinical conditioning (fused pair kernel when both are used) ----
    if cond_hidden and cond_msgs:
        h0_flat, cmsg_flat = clinical_embeddings(
            clinical, params['clinical_mlp'], params['clinical2msg_mlp'])
    elif cond_hidden:
        h0_flat = mlp3_pallas(clinical, params['clinical_mlp'])
        cmsg_flat = jnp.zeros((B, N * H), jnp.float32)
    elif cond_msgs:
        h0_flat = jnp.zeros((B, N * H), jnp.float32)
        cmsg_flat = mlp3_pallas(clinical, params['clinical2msg_mlp'])
    else:
        h0_flat = jnp.zeros((B, N * H), jnp.float32)
        cmsg_flat = jnp.zeros((B, N * H), jnp.float32)

    # ---- non-null edge types (skip_first semantics) ----
    non_null = list(range(K))
    if skip_first:
        edge = 0
        for k in edge_types_list:
            non_null.remove(edge)
            edge += k
    Ke = len(non_null)
    assert Ke > 0, "all edge types skipped; nothing to decode"
    idx = jnp.asarray(non_null)

    # ---- batch row-stacking: pick a batch tile targeting ~128 MXU rows ----
    max_bt = max(1, 128 // max(N, 1))
    B_TILE = 1
    for d in range(1, B + 1):
        if B % d == 0 and d <= max_bt:
            B_TILE = d
    n_tiles = B // B_TILE
    R_n, R_e = B_TILE * N, B_TILE * E

    x0 = data[:, :, 0, :]                                   # (B, N, Din)
    x0_t = x0.reshape(n_tiles, R_n, Din)
    h0_t = h0_flat.reshape(n_tiles, R_n, H)
    cmsg_t = cmsg_flat.reshape(n_tiles, R_n, H)

    # Block-diagonal relation one-hots (loop-invariant, shared by all tiles).
    eyeB = jnp.eye(B_TILE, dtype=jnp.float32)
    rr_bd = jnp.kron(eyeB, rel_rec.astype(jnp.float32))     # (R_e, R_n)
    rs_bd = jnp.kron(eyeB, rel_send.astype(jnp.float32))    # (R_e, R_n)

    # rel_type-weighted aggregation matrices (per tile, per edge type):
    # rrTw[t, k, (b,n), (b,e)] = rel_rec[e, n] * rel_type[b, e, k]
    rt_sel = jnp.take(rel_type, idx, axis=2)                # (B, E, Ke)
    wagg = jnp.einsum('en,bek->bkne', rel_rec.astype(jnp.float32), rt_sel)
    wagg = wagg.reshape(n_tiles, B_TILE, Ke, N, E)
    rrTw = jnp.einsum('tbkne,bc->tkbnce', wagg, eyeB)
    rrTw = rrTw.reshape(n_tiles, Ke, R_n, R_e)

    # ---- host-side weight prep (dense weights optionally cast to bf16) ----
    cd = compute_dtype
    w1r = params['msg_w1'][idx, :H, :].astype(cd)           # (Ke, H, H)
    w1s = params['msg_w1'][idx, H:, :].astype(cd)           # (Ke, H, H)
    b1 = params['msg_b1'][idx][:, None, :]                  # (Ke, 1, H) f32
    w2 = params['msg_w2'][idx].astype(cd)                   # (Ke, H, H)
    b2 = params['msg_b2'][idx][:, None, :]                  # (Ke, 1, H)
    gwi = params['in_w'].astype(cd)                         # (3, Din, H)
    gbi = params['in_b'][:, None, :]                        # (3, 1, H)
    gwh = jnp.stack([params['hr_w'], params['hn_w']]).astype(cd)   # (2, H, H)
    gbh = jnp.stack([params['hr_b'], params['hn_b']])               # (2, 1, H)
    wo1 = params['out1_w'].astype(cd); bo1 = params['out1_b']
    wo2 = params['out2_w'].astype(cd); bo2 = params['out2_b']
    wo3 = params['out3_w'].astype(cd); bo3 = params['out3_b']

    per_tile = [x0_t, h0_t, cmsg_t, rrTw]
    shared = [rr_bd, rs_bd, w1r, w1s, b1, w2, b2,
              gwi, gbi, gwh, gbh, wo1, bo1, wo2, bo2, wo3, bo3]

    def tile_spec(a):
        trailing = a.shape[1:]
        nt = len(trailing)
        return pl.BlockSpec((None,) + trailing, lambda i: (i,) + (0,) * nt)

    # VMEM budget: double-buffered per-tile blocks + single-buffered shared
    # weights + double-buffered output block + headroom.
    per_tile_block = sum(a.size * a.dtype.itemsize // n_tiles for a in per_tile)
    shared_bytes = sum(a.size * a.dtype.itemsize for a in shared)
    out_block = R_n * T * Din * 4
    vmem_bytes = 2 * per_tile_block + shared_bytes + 2 * out_block + (8 << 20)
    vmem_bytes = int(min(max(vmem_bytes, 32 << 20), 48 << 20))

    kernel = make_decoder_kernel(B_TILE, N, E, Din, H, Ke, T)
    out = pl.pallas_call(
        kernel,
        out_shape=jax.ShapeDtypeStruct((n_tiles, R_n, T, Din), jnp.float32),
        grid_spec=pltpu.PrefetchScalarGridSpec(
            num_scalar_prefetch=0,
            grid=(n_tiles,),
            in_specs=([tile_spec(a) for a in per_tile]
                      + [_const_full_spec(a) for a in shared]),
            out_specs=pl.BlockSpec((None, R_n, T, Din),
                                   lambda i: (i, 0, 0, 0)),
        ),
        compiler_params=pltpu.CompilerParams(
            dimension_semantics=("parallel",),     # tile axis across TCs (v7x)
            vmem_limit_bytes=vmem_bytes),
    )(*per_tile, *shared)

    # (n_tiles, B_TILE*N, T, Din) -> (B, N, T, Din): contiguous leading-dim
    # split, i.e. a free metadata reshape (no transpose, no concat).
    return out.reshape(B, N, T, Din)


# ----------------------------------------------------------------------------
# Deterministic parameter init (shapes follow the module's __init__).
# ----------------------------------------------------------------------------
def init_params(key, n_in, n_atoms, n_clinical, edge_types, n_hid):
    keys = jax.random.split(key, 32)
    it = iter(keys)

    def w(shape, scale=0.1):
        return jax.random.normal(next(it), shape, jnp.float32) * scale

    p = {}
    p['msg_w1'] = w((edge_types, 2 * n_hid, n_hid))
    p['msg_b1'] = w((edge_types, n_hid))
    p['msg_w2'] = w((edge_types, n_hid, n_hid))
    p['msg_b2'] = w((edge_types, n_hid))
    p['in_w'] = w((3, n_in, n_hid))        # in_r, in_z, in_n stacked
    p['in_b'] = w((3, n_hid))
    p['hr_w'] = w((n_hid, n_hid))
    p['hr_b'] = w((1, n_hid))
    p['hn_w'] = w((n_hid, n_hid))
    p['hn_b'] = w((1, n_hid))
    # self.hz exists in __init__ but is never used in forward -> omitted.
    p['out1_w'] = w((n_hid, n_hid))
    p['out1_b'] = w((1, n_hid))
    p['out2_w'] = w((n_hid, n_hid))
    p['out2_b'] = w((1, n_hid))
    p['out3_w'] = w((n_hid, n_in))
    p['out3_b'] = w((1, n_in))
    p['clinical_mlp'] = (
        w((n_clinical, n_hid)), w((1, n_hid)),
        w((n_hid, 2 * n_hid)), w((1, 2 * n_hid)),
        w((2 * n_hid, n_atoms * n_hid)), w((1, n_atoms * n_hid)))
    p['clinical2msg_mlp'] = (
        w((n_clinical, n_hid)), w((1, n_hid)),
        w((n_hid, 2 * n_hid)), w((1, 2 * n_hid)),
        w((2 * n_hid, n_atoms * n_hid)), w((1, n_atoms * n_hid)))
    return p


# ----------------------------------------------------------------------------
# Pure-JAX reference (mirrors PyTorch forward, do_prob = 0).
# ----------------------------------------------------------------------------
def reference_forward(data, rel_type, rel_rec, rel_send, clinical, params,
                      non_null_idxs):
    B, N, T, Din = data.shape
    H = params['hr_w'].shape[0]
    inputs = jnp.transpose(data, (0, 2, 1, 3))

    def mlp3(x, p):
        w1, b1, w2, b2, w3, b3 = p
        h = jax.nn.relu(x @ w1 + b1)
        h = jax.nn.relu(h @ w2 + b2)
        return h @ w3 + b3

    hidden = mlp3(clinical, params['clinical_mlp']).reshape(B, N, H)
    cmsg = mlp3(clinical, params['clinical2msg_mlp']).reshape(B, N, H)

    def step(x, hidden):
        receivers = jnp.einsum('en,bnh->beh', rel_rec, hidden)
        senders = jnp.einsum('en,bnh->beh', rel_send, hidden)
        pre_msg = jnp.concatenate([receivers, senders], axis=-1)
        all_msgs = jnp.zeros((B, rel_rec.shape[0], H), jnp.float32)
        for k in non_null_idxs:
            m = jax.nn.relu(pre_msg @ params['msg_w1'][k] + params['msg_b1'][k])
            m = jax.nn.relu(m @ params['msg_w2'][k] + params['msg_b2'][k])
            all_msgs = all_msgs + m * rel_type[:, :, k:k + 1]
        agg = jnp.einsum('beh,en->bnh', all_msgs, rel_rec) + cmsg
        gi = [x @ params['in_w'][i] + params['in_b'][i] for i in range(3)]
        hr = agg @ params['hr_w'] + params['hr_b']
        hn = agg @ params['hn_w'] + params['hn_b']
        r = jax.nn.sigmoid(gi[0] + hr)
        z = jax.nn.sigmoid(gi[1] + hr)
        n = jnp.tanh(gi[2] + r * hn)
        hidden = (1.0 - z) * n + z * hidden
        p = jax.nn.relu(hidden @ params['out1_w'] + params['out1_b'])
        p = jax.nn.relu(p @ params['out2_w'] + params['out2_b'])
        p = p @ params['out3_w'] + params['out3_b']
        return x + p, hidden

    pred_all = [inputs[:, 0]]
    for _ in range(T - 1):
        pred, hidden = step(pred_all[-1], hidden)
        pred_all.append(pred)
    preds = jnp.stack(pred_all, axis=1)
    return jnp.transpose(preds, (0, 2, 1, 3))


if __name__ == "__main__":
    B, N_ATOMS, N_IN, N_HID, N_CLIN, K, T = 2, 4, 4, 32, 8, 2, 8

    key = jax.random.PRNGKey(0)
    k_data, k_rel, k_clin, k_par = jax.random.split(key, 4)

    params = init_params(k_par, N_IN, N_ATOMS, N_CLIN, K, N_HID)

    data = jax.random.normal(k_data, (B, N_ATOMS, T, N_IN), jnp.float32)
    clinical = jax.random.normal(k_clin, (B, N_CLIN), jnp.float32)

    # Fully-connected (no self-loop) NRI relation one-hots.
    pairs = [(i, j) for i in range(N_ATOMS) for j in range(N_ATOMS) if i != j]
    E = len(pairs)
    rel_rec = jax.nn.one_hot(jnp.array([i for i, _ in pairs]), N_ATOMS,
                             dtype=jnp.float32)
    rel_send = jax.nn.one_hot(jnp.array([j for _, j in pairs]), N_ATOMS,
                              dtype=jnp.float32)
    rel_type = jax.nn.softmax(
        jax.random.normal(k_rel, (B, E, K), jnp.float32), axis=-1)

    # compute_dtype=jnp.bfloat16 engages the bf16 MXU at full rate on
    # v5e/v6e/v7x; f32 used here so the check against the f32 reference holds.
    out = rnn_decoder_multi_forward(data, rel_type, rel_rec, rel_send,
                                    clinical, params,
                                    compute_dtype=jnp.float32)
    out = jax.block_until_ready(out)
    assert out.shape == (B, N_ATOMS, T, N_IN)

    ref = reference_forward(data, rel_type, rel_rec, rel_send, clinical,
                            params, list(range(K)))
    max_err = float(jnp.max(jnp.abs(out - ref)))
    if max_err > 5e-2:
        raise AssertionError(f"kernel vs reference mismatch: {max_err}")

    print("KERNEL_OK")
</pallas_src>

<mosaic_0001>
module attributes {stable_mosaic.version = 11 : i64} {
  func.func @_mlp3_pair_kernel(%arg0: i32, %arg1: memref<2x8xf32, #tpu.memory_space<vmem>>, %arg2: memref<8x32xf32, #tpu.memory_space<vmem>>, %arg3: memref<1x32xf32, #tpu.memory_space<vmem>>, %arg4: memref<32x64xf32, #tpu.memory_space<vmem>>, %arg5: memref<1x64xf32, #tpu.memory_space<vmem>>, %arg6: memref<64x128xf32, #tpu.memory_space<vmem>>, %arg7: memref<1x128xf32, #tpu.memory_space<vmem>>, %arg8: memref<8x32xf32, #tpu.memory_space<vmem>>, %arg9: memref<1x32xf32, #tpu.memory_space<vmem>>, %arg10: memref<32x64xf32, #tpu.memory_space<vmem>>, %arg11: memref<1x64xf32, #tpu.memory_space<vmem>>, %arg12: memref<64x128xf32, #tpu.memory_space<vmem>>, %arg13: memref<1x128xf32, #tpu.memory_space<vmem>>, %arg14: memref<2x128xf32, #tpu.memory_space<vmem>>, %arg15: memref<2x128xf32, #tpu.memory_space<vmem>>) attributes {dimension_semantics = [#tpu.dimension_semantics<parallel>], iteration_bounds = array<i64: 1>, scalar_prefetch = 0 : i64, scratch_operands = 0 : i64, tpu.core_type = #tpu.core_type<tc>, window_params = [{pipeline_mode = #tpu.pipeline_mode<synchronous>, transform_indices = @transform_0, window_bounds = array<i64: 2, 8>}, {pipeline_mode = #tpu.pipeline_mode<synchronous>, transform_indices = @transform_1, window_bounds = array<i64: 8, 32>}, {pipeline_mode = #tpu.pipeline_mode<synchronous>, transform_indices = @transform_2, window_bounds = array<i64: 1, 32>}, {pipeline_mode = #tpu.pipeline_mode<synchronous>, transform_indices = @transform_3, window_bounds = array<i64: 32, 64>}, {pipeline_mode = #tpu.pipeline_mode<synchronous>, transform_indices = @transform_4, window_bounds = array<i64: 1, 64>}, {transform_indices = @transform_5, window_bounds = array<i64: 64, 128>}, {transform_indices = @transform_6, window_bounds = array<i64: 1, 128>}, {pipeline_mode = #tpu.pipeline_mode<synchronous>, transform_indices = @transform_7, window_bounds = array<i64: 8, 32>}, {pipeline_mode = #tpu.pipeline_mode<synchronous>, transform_indices = @transform_8, window_bounds = array<i64: 1, 32>}, {pipeline_mode = #tpu.pipeline_mode<synchronous>, transform_indices = @transform_9, window_bounds = array<i64: 32, 64>}, {pipeline_mode = #tpu.pipeline_mode<synchronous>, transform_indices = @transform_10, window_bounds = array<i64: 1, 64>}, {transform_indices = @transform_11, window_bounds = array<i64: 64, 128>}, {transform_indices = @transform_12, window_bounds = array<i64: 1, 128>}, {transform_indices = @transform_13, window_bounds = array<i64: 2, 128>}, {transform_indices = @transform_14, window_bounds = array<i64: 2, 128>}]} {
    %c0 = arith.constant 0 : index
    %c0_0 = arith.constant 0 : index
    %0 = vector.load %arg1[%c0, %c0_0] : memref<2x8xf32, #tpu.memory_space<vmem>>, vector<2x8xf32>
    %c0_1 = arith.constant 0 : index
    %c0_2 = arith.constant 0 : index
    %1 = vector.load %arg2[%c0_1, %c0_2] : memref<8x32xf32, #tpu.memory_space<vmem>>, vector<8x32xf32>
    %cst = arith.constant dense<0.000000e+00> : vector<2x32xf32>
    %2 = tpu.matmul %0, %1, %cst {dimension_numbers = #tpu.dot_dimension_numbers<[1], [0], [0], [1], [0, 0, 1, 1], [], []>} : vector<2x8xf32>, vector<8x32xf32>, vector<2x32xf32> -> vector<2x32xf32>
    %c0_3 = arith.constant 0 : index
    %c0_4 = arith.constant 0 : index
    %3 = vector.load %arg3[%c0_3, %c0_4] : memref<1x32xf32, #tpu.memory_space<vmem>>, vector<1x32xf32>
    %4 = vector.broadcast %3 : vector<1x32xf32> to vector<2x32xf32>
    %5 = arith.addf %2, %4 : vector<2x32xf32>
    %cst_5 = arith.constant 0.000000e+00 : f32
    %6 = vector.broadcast %cst_5 : f32 to vector<2x32xf32>
    %7 = arith.maximumf %5, %6 : vector<2x32xf32>
    %c0_6 = arith.constant 0 : index
    %c0_7 = arith.constant 0 : index
    %8 = vector.load %arg4[%c0_6, %c0_7] : memref<32x64xf32, #tpu.memory_space<vmem>>, vector<32x64xf32>
    %cst_8 = arith.constant dense<0.000000e+00> : vector<2x64xf32>
    %9 = tpu.matmul %7, %8, %cst_8 {dimension_numbers = #tpu.dot_dimension_numbers<[1], [0], [0], [1], [0, 0, 1, 1], [], []>} : vector<2x32xf32>, vector<32x64xf32>, vector<2x64xf32> -> vector<2x64xf32>
    %c0_9 = arith.constant 0 : index
    %c0_10 = arith.constant 0 : index
    %10 = vector.load %arg5[%c0_9, %c0_10] : memref<1x64xf32, #tpu.memory_space<vmem>>, vector<1x64xf32>
    %11 = vector.broadcast %10 : vector<1x64xf32> to vector<2x64xf32>
    %12 = arith.addf %9, %11 : vector<2x64xf32>
    %cst_11 = arith.constant 0.000000e+00 : f32
    %13 = vector.broadcast %cst_11 : f32 to vector<2x64xf32>
    %14 = arith.maximumf %12, %13 : vector<2x64xf32>
    %c0_12 = arith.constant 0 : index
    %c0_13 = arith.constant 0 : index
    %15 = vector.load %arg6[%c0_12, %c0_13] : memref<64x128xf32, #tpu.memory_space<vmem>>, vector<64x128xf32>
    %cst_14 = arith.constant dense<0.000000e+00> : vector<2x128xf32>
    %16 = tpu.matmul %14, %15, %cst_14 {dimension_numbers = #tpu.dot_dimension_numbers<[1], [0], [0], [1], [0, 0, 1, 1], [], []>} : vector<2x64xf32>, vector<64x128xf32>, vector<2x128xf32> -> vector<2x128xf32>
    %c0_15 = arith.constant 0 : index
    %c0_16 = arith.constant 0 : index
    %17 = vector.load %arg7[%c0_15, %c0_16] : memref<1x128xf32, #tpu.memory_space<vmem>>, vector<1x128xf32>
    %18 = vector.broadcast %17 : vector<1x128xf32> to vector<2x128xf32>
    %19 = arith.addf %16, %18 : vector<2x128xf32>
    %c0_17 = arith.constant 0 : index
    %c0_18 = arith.constant 0 : index
    %20 = vector.load %arg14[%c0_17, %c0_18] : memref<2x128xf32, #tpu.memory_space<vmem>>, vector<2x128xf32>
    tpu.vector_store %arg14[%c0_17, %c0_18], %19 {strides = array<i32>} : memref<2x128xf32, #tpu.memory_space<vmem>>, vector<2x128xf32>,
    %c0_19 = arith.constant 0 : index
    %c0_20 = arith.constant 0 : index
    %21 = vector.load %arg8[%c0_19, %c0_20] : memref<8x32xf32, #tpu.memory_space<vmem>>, vector<8x32xf32>
    %cst_21 = arith.constant dense<0.000000e+00> : vector<2x32xf32>
    %22 = tpu.matmul %0, %21, %cst_21 {dimension_numbers = #tpu.dot_dimension_numbers<[1], [0], [0], [1], [0, 0, 1, 1], [], []>} : vector<2x8xf32>, vector<8x32xf32>, vector<2x32xf32> -> vector<2x32xf32>
    %c0_22 = arith.constant 0 : index
    %c0_23 = arith.constant 0 : index
    %23 = vector.load %arg9[%c0_22, %c0_23] : memref<1x32xf32, #tpu.memory_space<vmem>>, vector<1x32xf32>
    %24 = vector.broadcast %23 : vector<1x32xf32> to vector<2x32xf32>
    %25 = arith.addf %22, %24 : vector<2x32xf32>
    %cst_24 = arith.constant 0.000000e+00 : f32
    %26 = vector.broadcast %cst_24 : f32 to vector<2x32xf32>
    %27 = arith.maximumf %25, %26 : vector<2x32xf32>
    %c0_25 = arith.constant 0 : index
    %c0_26 = arith.constant 0 : index
    %28 = vector.load %arg10[%c0_25, %c0_26] : memref<32x64xf32, #tpu.memory_space<vmem>>, vector<32x64xf32>
    %cst_27 = arith.constant dense<0.000000e+00> : vector<2x64xf32>
    %29 = tpu.matmul %27, %28, %cst_27 {dimension_numbers = #tpu.dot_dimension_numbers<[1], [0], [0], [1], [0, 0, 1, 1], [], []>} : vector<2x32xf32>, vector<32x64xf32>, vector<2x64xf32> -> vector<2x64xf32>
    %c0_28 = arith.constant 0 : index
    %c0_29 = arith.constant 0 : index
    %30 = vector.load %arg11[%c0_28, %c0_29] : memref<1x64xf32, #tpu.memory_space<vmem>>, vector<1x64xf32>
    %31 = vector.broadcast %30 : vector<1x64xf32> to vector<2x64xf32>
    %32 = arith.addf %29, %31 : vector<2x64xf32>
    %cst_30 = arith.constant 0.000000e+00 : f32
    %33 = vector.broadcast %cst_30 : f32 to vector<2x64xf32>
    %34 = arith.maximumf %32, %33 : vector<2x64xf32>
    %c0_31 = arith.constant 0 : index
    %c0_32 = arith.constant 0 : index
    %35 = vector.load %arg12[%c0_31, %c0_32] : memref<64x128xf32, #tpu.memory_space<vmem>>, vector<64x128xf32>
    %cst_33 = arith.constant dense<0.000000e+00> : vector<2x128xf32>
    %36 = tpu.matmul %34, %35, %cst_33 {dimension_numbers = #tpu.dot_dimension_numbers<[1], [0], [0], [1], [0, 0, 1, 1], [], []>} : vector<2x64xf32>, vector<64x128xf32>, vector<2x128xf32> -> vector<2x128xf32>
    %c0_34 = arith.constant 0 : index
    %c0_35 = arith.constant 0 : index
    %37 = vector.load %arg13[%c0_34, %c0_35] : memref<1x128xf32, #tpu.memory_space<vmem>>, vector<1x128xf32>
    %38 = vector.broadcast %37 : vector<1x128xf32> to vector<2x128xf32>
    %39 = arith.addf %36, %38 : vector<2x128xf32>
    %c0_36 = arith.constant 0 : index
    %c0_37 = arith.constant 0 : index
    %40 = vector.load %arg15[%c0_36, %c0_37] : memref<2x128xf32, #tpu.memory_space<vmem>>, vector<2x128xf32>
    tpu.vector_store %arg15[%c0_36, %c0_37], %39 {strides = array<i32>} : memref<2x128xf32, #tpu.memory_space<vmem>>, vector<2x128xf32>,
    return
  }
  func.func @transform_0(%arg0: i32) -> (i32, i32) {
    %c0_i32 = arith.constant 0 : i32
    %c0_i32_0 = arith.constant 0 : i32
    %c0_i32_1 = arith.constant 0 : i32
    return %c0_i32, %c0_i32_0 : i32, i32
  }
  func.func @transform_1(%arg0: i32) -> (i32, i32) {
    %c0_i32 = arith.constant 0 : i32
    %c0_i32_0 = arith.constant 0 : i32
    %c0_i32_1 = arith.constant 0 : i32
    return %c0_i32, %c0_i32_0 : i32, i32
  }
  func.func @transform_2(%arg0: i32) -> (i32, i32) {
    %c0_i32 = arith.constant 0 : i32
    %c0_i32_0 = arith.constant 0 : i32
    %c0_i32_1 = arith.constant 0 : i32
    return %c0_i32, %c0_i32_0 : i32, i32
  }
  func.func @transform_3(%arg0: i32) -> (i32, i32) {
    %c0_i32 = arith.constant 0 : i32
    %c0_i32_0 = arith.constant 0 : i32
    %c0_i32_1 = arith.constant 0 : i32
    return %c0_i32, %c0_i32_0 : i32, i32
  }
  func.func @transform_4(%arg0: i32) -> (i32, i32) {
    %c0_i32 = arith.constant 0 : i32
    %c0_i32_0 = arith.constant 0 : i32
    %c0_i32_1 = arith.constant 0 : i32
    return %c0_i32, %c0_i32_0 : i32, i32
  }
  func.func @transform_5(%arg0: i32) -> (i32, i32) {
    %c0_i32 = arith.constant 0 : i32
    %c0_i32_0 = arith.constant 0 : i32
    return %c0_i32, %arg0 : i32, i32
  }
  func.func @transform_6(%arg0: i32) -> (i32, i32) {
    %c0_i32 = arith.constant 0 : i32
    %c0_i32_0 = arith.constant 0 : i32
    return %c0_i32, %arg0 : i32, i32
  }
  func.func @transform_7(%arg0: i32) -> (i32, i32) {
    %c0_i32 = arith.constant 0 : i32
    %c0_i32_0 = arith.constant 0 : i32
    %c0_i32_1 = arith.constant 0 : i32
    return %c0_i32, %c0_i32_0 : i32, i32
  }
  func.func @transform_8(%arg0: i32) -> (i32, i32) {
    %c0_i32 = arith.constant 0 : i32
    %c0_i32_0 = arith.constant 0 : i32
    %c0_i32_1 = arith.constant 0 : i32
    return %c0_i32, %c0_i32_0 : i32, i32
  }
  func.func @transform_9(%arg0: i32) -> (i32, i32) {
    %c0_i32 = arith.constant 0 : i32
    %c0_i32_0 = arith.constant 0 : i32
    %c0_i32_1 = arith.constant 0 : i32
    return %c0_i32, %c0_i32_0 : i32, i32
  }
  func.func @transform_10(%arg0: i32) -> (i32, i32) {
    %c0_i32 = arith.constant 0 : i32
    %c0_i32_0 = arith.constant 0 : i32
    %c0_i32_1 = arith.constant 0 : i32
    return %c0_i32, %c0_i32_0 : i32, i32
  }
  func.func @transform_11(%arg0: i32) -> (i32, i32) {
    %c0_i32 = arith.constant 0 : i32
    %c0_i32_0 = arith.constant 0 : i32
    return %c0_i32, %arg0 : i32, i32
  }
  func.func @transform_12(%arg0: i32) -> (i32, i32) {
    %c0_i32 = arith.constant 0 : i32
    %c0_i32_0 = arith.constant 0 : i32
    return %c0_i32, %arg0 : i32, i32
  }
  func.func @transform_13(%arg0: i32) -> (i32, i32) {
    %c0_i32 = arith.constant 0 : i32
    %c0_i32_0 = arith.constant 0 : i32
    return %c0_i32, %arg0 : i32, i32
  }
  func.func @transform_14(%arg0: i32) -> (i32, i32) {
    %c0_i32 = arith.constant 0 : i32
    %c0_i32_0 = arith.constant 0 : i32
    return %c0_i32, %arg0 : i32, i32
  }
}

</mosaic_0001>

<bundles_post_ra>
// kernel: tpu_custom_call.1
= control target key start
LH: loop header
LB: loop body
LE: loop exit
PB: predicated region body
PF: predicated region fallthrough
CT: control target
= control target key end

     0   :  { %20 = vsyncpa [#allocation3], 0  ;;  %s782_s0 = inlined_call_operand.hbm [shape: f32[2,8], index: 0, kind: input, shape index: {}]   ;;  %s783_s1 = inlined_call_operand.hbm [shape: f32[8,32], index: 1, kind: input, shape index: {}]   ;;  %s784_s2 = inlined_call_operand.vmem [shape: f32[1,32], index: 2, kind: input, shape index: {}]   ;;  %s785_s3 = inlined_call_operand.hbm [shape: f32[32,64], index: 3, kind: input, shape index: {}]   ;;  %s786_s4 = inlined_call_operand.vmem [shape: f32[1,64], index: 4, kind: input, shape index: {}]   ;;  %s787_s5 = inlined_call_operand.hbm [shape: f32[64,128], index: 5, kind: input, shape index: {}]   ;;  %s788_s6 = inlined_call_operand.vmem [shape: f32[1,128], index: 6, kind: input, shape index: {}]   ;;  %s789_s7 = inlined_call_operand.hbm [shape: f32[8,32], index: 7, kind: input, shape index: {}]   ;;  %s790_s8 = inlined_call_operand.vmem [shape: f32[1,32], index: 8, kind: input, shape index: {}]   ;;  %s791_s9 = inlined_call_operand.hbm [shape: f32[32,64], index: 9, kind: input, shape index: {}]   ;;  %s792_s10 = inlined_call_operand.vmem [shape: f32[1,64], index: 10, kind: input, shape index: {}]   ;;  %s793_s11 = inlined_call_operand.hbm [shape: f32[64,128], index: 11, kind: input, shape index: {}]   ;;  %s794_s12 = inlined_call_operand.vmem [shape: f32[1,128], index: 12, kind: input, shape index: {}]   ;;  %s795_s13 = inlined_call_operand.hbm [shape: f32[2,128], index: 13, kind: output, shape index: {0}]   ;;  %s796_s14 = inlined_call_operand.hbm [shape: f32[2,128], index: 14, kind: output, shape index: {1}]  }
   0x1   :  { %21 = vsyncpa [#allocation6], 0 }
   0x2   :  { %22 = vsyncpa [#allocation9], 0 }
   0x3   :  { %23 = vsyncpa [#allocation12], 0 }
   0x4   :  { %24 = vsyncpa [#allocation4], 0  ;;  %s42_s15 = sshll.u32 %s783_s1, 4  ;;  %s43_s15 = int_to_ptr.hbm [resolvable:$true] %s42_s15 }
   0x5   :  { %25 = vsyncpa [#allocation16], 0  ;;  %s633_s16 = smov [#allocation5]   ;;  %s69_s20 = sshll.u32 %s787_s5, 4  ;;  %s70_s20 = int_to_ptr.hbm [resolvable:$true] %s69_s20 }
   0x6   :  { %s44_s17 = sshll.u32 %s633_s16, 4  ;;  %s634_s21 = smov [#allocation8]   ;;  %s45_s17 = int_to_ptr.vmem [resolvable:$true] %s44_s17 }
   0x7   :  { %47 = dma.hbm_to_vmem [thread:$0]  %s43_s15, 128, %s45_s17, [#allocation6]  }
   0x8   :  { %s71_s22 = sshll.u32 %s634_s21, 4  ;;  %s97_s25 = sshll.u32 %s791_s9, 4  ;;  %s72_s22 = int_to_ptr.vmem [resolvable:$true] %s71_s22  ;;  %s98_s25 = int_to_ptr.hbm [resolvable:$true] %s97_s25 }
   0x9   :  { %s635_s1 = smov 128   ;;  %s636_s26 = smov 8  }
   0xa   :  { %77 = dma.hbm_to_vmem [thread:$0]  %s70_s20, 1024, %s72_s22, [#allocation9], %s635_s1, %s635_s1, %s636_s26  }
   0xb   :  { %s31_s29 = sshll.u32 %s782_s0, 4  ;;  %s637_s5 = smov [#allocation11]   ;;  %s32_s29 = int_to_ptr.hbm [resolvable:$true] %s31_s29 }
   0xc   :  { %s99_s30 = sshll.u32 %s637_s5, 4  ;;  %s638_s9 = smov [#allocation2]   ;;  %s100_s30 = int_to_ptr.vmem [resolvable:$true] %s99_s30 }
   0xd   :  { %105 = dma.hbm_to_vmem [thread:$0]  %s98_s25, 512, %s100_s30, [#allocation12], %s635_s1, %s635_s1, %s636_s26  }
   0xe   :  { %s33_s15 = sshll.u32 %s638_s9, 4  ;;  %s54_s18 = sshll.u32 %s785_s3, 4  ;;  %s34_s15 = int_to_ptr.vmem [resolvable:$true] %s33_s15  ;;  %s55_s18 = int_to_ptr.hbm [resolvable:$true] %s54_s18 }
   0xf   :  { %36 = dma.hbm_to_vmem [thread:$0]  %s32_s29, 32, %s34_s15, [#allocation3]  }
  0x10   :  { %s85_s0 = sshll.u32 %s789_s7, 4  ;;  %s639_s21 = smov [#allocation7]   ;;  %s86_s0 = int_to_ptr.hbm [resolvable:$true] %s85_s0 }
  0x11   :  { %s56_s22 = sshll.u32 %s639_s21, 4  ;;  %s640_s23 = smov [#allocation10]   ;;  %s57_s22 = int_to_ptr.vmem [resolvable:$true] %s56_s22 }
  0x12   :  { %62 = dma.hbm_to_vmem [thread:$0]  %s55_s18, 512, %s57_s22, [#allocation6], %s635_s1, %s635_s1, %s636_s26  }
  0x13   :  { %s87_s24 = sshll.u32 %s640_s23, 4  ;;  %s112_s3 = sshll.u32 %s793_s11, 4  ;;  %s88_s24 = int_to_ptr.vmem [resolvable:$true] %s87_s24  ;;  %s113_s3 = int_to_ptr.hbm [resolvable:$true] %s112_s3 }
  0x14   :  { %90 = dma.hbm_to_vmem [thread:$0]  %s86_s0, 128, %s88_s24, [#allocation9]  }
  0x15   :  { %s641_s28 = smov [#allocation13]  }
  0x16   :  { %s114_s29 = sshll.u32 %s641_s28, 4  ;;  %s115_s29 = int_to_ptr.vmem [resolvable:$true] %s114_s29 }
  0x17   :  { %120 = dma.hbm_to_vmem [thread:$0]  %s113_s3, 1024, %s115_s29, [#allocation12], %s635_s1, %s635_s1, %s636_s26  }
  0x18   :  { %621 = dma.done.wait [#allocation3], 32  }
  0x19   :  { %622 = vsyncadd [#allocation3], 4294967264 }
  0x1a   :  { %623 = dma.done.wait [#allocation6], 640  }
  0x1b   :  { %624 = vsyncadd [#allocation6], 4294966656 }
  0x1c   :  { %625 = dma.done.wait [#allocation9], 1152  }
  0x1d   :  { %626 = vsyncadd [#allocation9], 4294966144 }
  0x1e   :  { %627 = dma.done.wait [#allocation12], 1536  }
  0x1f   :  { %628 = vsyncadd [#allocation12], 4294965760  ;;  %vm157_vm0 = vcmask 64512   ;;  %v152_v0 = vld [vmem:[#allocation5] sm:$0xff]  ;;  %v151_v1 = vld [vmem:[#allocation2] sm:$0x3] }
  0x20   :  { %v185_v2 = vld [vmem:[#allocation7 + $0x18] sm:$0xff]  ;;  %176 = vmatpush.msra.mxu0 %v152_v0  ;;  %v184_v3 = vld [vmem:[#allocation7 + $0x10] sm:$0xff]  ;;  %v183_v4 = vld [vmem:[#allocation7 + $0x8] sm:$0xff]  ;;  %vm190_vm1 = vcmask 261120   ;;  %vm227_vm2 = vcmask 523264   ;;  %s353_s19 = sshll.u32 %s795_s13, 4  ;;  %s354_s19 = int_to_ptr.hbm [resolvable:$true] %s353_s19 }
  0x21   :  { %206 = vmatpush.msra.mxu1 %v185_v2  ;;  %382 = vmatmul.msk.f32.vlgmr.msra.gmra.mxu0 %vm157_vm0, %v151_v1  ;;  %v182_v5 = vld [vmem:[#allocation7] sm:$0xff]  ;;  %v222_v7 = vld [vmem:[#allocation8 + $0x38] sm:$0xff]  ;;  %v221_v8 = vld [vmem:[#allocation8 + $0x30] sm:$0xff]  ;;  %s364_s23 = sshll.u32 %s796_s14, 4  ;;  %s365_s23 = int_to_ptr.hbm [resolvable:$true] %s364_s23 }
  0x22   :  { %v252_v6 = vld [vmem:[#allocation10] sm:$0xff]  ;;  %239 = vmatpush.msra.mxu2 %v222_v7  ;;  %v220_v9 = vld [vmem:[#allocation8 + $0x28] sm:$0xff]  ;;  %v218_v11 = vld [vmem:[#allocation8 + $0x18] sm:$0xff] }
  0x23   :  { %207 = vmatpush.msra.mxu1 %v184_v3  ;;  %v219_v10 = vld [vmem:[#allocation8 + $0x20] sm:$0xff]  ;;  %v399_v12 = vld [vmem:[%s784_s2] ss:$0 sm:$0xff]  ;;  %v216_v17 = vld [vmem:[#allocation8 + $0x8] sm:$0xff] }
  0x24   :  { %240 = vmatpush.msra.mxu2 %v221_v8  ;;  %v217_v16 = vld [vmem:[#allocation8 + $0x10] sm:$0xff]  ;;  %v215_v18 = vld [vmem:[#allocation8] sm:$0xff]  ;;  %v280_v20 = vld [vmem:[#allocation11 + $0x10] sm:$0xff] }
  0x25   :  { %208 = vmatpush.msra.mxu1 %v183_v4  ;;  %v281_v19 = vld [vmem:[#allocation11 + $0x18] sm:$0xff]  ;;  %v279_v21 = vld [vmem:[#allocation11 + $0x8] sm:$0xff]  ;;  %v278_v22 = vld [vmem:[#allocation11] sm:$0xff] }
  0x26   :  { %241 = vmatpush.msra.mxu2 %v220_v9  ;;  %301 = vmatpush.msrb.mxu0 %v281_v19  ;;  %v317_v23 = vld [vmem:[#allocation13 + $0x38] sm:$0xff]  ;;  %v316_v24 = vld [vmem:[#allocation13 + $0x30] sm:$0xff]  ;;  %v315_v25 = vld [vmem:[#allocation13 + $0x28] sm:$0xff] }
  0x27   :  { %209 = vmatpush.msra.mxu1 %v182_v5  ;;  %333 = vmatpush.msra.mxu3 %v317_v23  ;;  %v314_v26 = vld [vmem:[#allocation13 + $0x20] sm:$0xff]  ;;  %v400_v27 = vld [vmem:[%s786_s4] ss:$0 sm:$0xff]  ;;  %v313_v35 = vld [vmem:[#allocation13 + $0x18] sm:$0xff] }
  0x28   :  { %242 = vmatpush.msra.mxu2 %v219_v10  ;;  %302 = vmatpush.msrb.mxu0 %v280_v20  ;;  %v401_v31 = vld [vmem:[%s790_s8] ss:$0 sm:$0xff]  ;;  %v312_v36 = vld [vmem:[#allocation13 + $0x10] sm:$0xff]  ;;  %v310_v38 = vld [vmem:[#allocation13] sm:$0xff]  ;;  %s642_s8 = smov [#allocation14]  }
  0x29   :  { %272 = vmatpush.msrb.mxu1 %v252_v6  ;;  %334 = vmatpush.msra.mxu3 %v316_v24  ;;  %v311_v37 = vld [vmem:[#allocation13 + $0x8] sm:$0xff]  ;;  %s351_s16 = sshll.u32 %s642_s8, 4  ;;  %s352_s16 = int_to_ptr.vmem [resolvable:$true] %s351_s16 }
  0x2a   :  { %243 = vmatpush.msra.mxu2 %v218_v11  ;;  %303 = vmatpush.msrb.mxu0 %v279_v21  ;;  %v402_v39 = vld [vmem:[%s788_s6] ss:$0 sm:$0xff] }
  0x2b   :  { %335 = vmatpush.msra.mxu3 %v315_v25  ;;  %v403_v40 = vld [vmem:[%s792_s10] ss:$0 sm:$0xff]  ;;  %s643_s10 = smov [#allocation15]  }
  0x2c   :  { %244 = vmatpush.msra.mxu2 %v217_v16  ;;  %304 = vmatpush.msrb.mxu0 %v278_v22  ;;  %v404_v46 = vld [vmem:[%s794_s12] ss:$0 sm:$0xff]  ;;  %s362_s0 = sshll.u32 %s643_s10, 4  ;;  %s363_s0 = int_to_ptr.vmem [resolvable:$true] %s362_s0 }
  0x2d   :  { %336 = vmatpush.msra.mxu3 %v314_v26 }
  0x2e   :  { %245 = vmatpush.msra.mxu2 %v216_v17 }
  0x2f   :  { %337 = vmatpush.msra.mxu3 %v313_v35 }
  0x30   :  { %246 = vmatpush.msra.mxu2 %v215_v18 }
  0x31   :  { %338 = vmatpush.msra.mxu3 %v312_v36 }
  0x33   :  { %339 = vmatpush.msra.mxu3 %v311_v37 }
  0x35   :  { %340 = vmatpush.msra.mxu3 %v310_v38 }
  0x9e   :  { %v178_v13 = vpop.f32.mrf.mxu0 }
  0x9f   :  { %v179_v14 = vadd.f32 %v399_v12, %v178_v13 }
  0xa1   :  { %v181_v15 = vmax.f32 %v179_v14, 0.0 }
  0xa3   :  { %383 = vmatmul.msk.f32.vlgmr.msra.gmra.mxu1 %vm190_vm1, %v181_v15 }
  0xab   :  { %385 = vmatmul.msk.f32.vlgmr.msrb.gmra.mxu1 %vm157_vm0, %v151_v1 }
 0x120   :  { %v211_v28 = vpop.f32.mrf.mxu1 }
 0x121   :  { %v212_v29 = vadd.f32 %v400_v27, %v211_v28 }
 0x123   :  { %v214_v30 = vmax.f32 %v212_v29, 0.0 }
 0x125   :  { %384 = vmatmul.msk.f32.vlgmr.msra.gmra.mxu2 %vm227_vm2, %v214_v30 }
 0x128   :  { %v274_v32 = vpop.f32.mrf.mxu1 }
 0x129   :  { %v275_v33 = vadd.f32 %v401_v31, %v274_v32 }
 0x12b   :  { %v277_v34 = vmax.f32 %v275_v33, 0.0 }
 0x12d   :  { %386 = vmatmul.msk.f32.vlgmr.msrb.gmra.mxu0 %vm190_vm1, %v277_v34 }
 0x1a8   :  { %v248_v41 = vpop.f32.mrf.mxu2 }
 0x1a9   :  { %v249_v42 = vadd.f32 %v402_v39, %v248_v41 }
 0x1aa   :  { %v306_v43 = vpop.f32.mrf.mxu0 }
 0x1ab   :  { %251 = vst [vmem:[#allocation14] sm:$0x3] %v249_v42  ;;  %v307_v44 = vadd.f32 %v403_v40, %v306_v43 }
 0x1ac   :  { %356 = dma.vmem_to_hbm [thread:$0]  %s352_s16, 32, %s354_s19, [#allocation4]  }
 0x1ad   :  { %v309_v45 = vmax.f32 %v307_v44, 0.0 }
 0x1af   :  { %387 = vmatmul.msk.f32.vlgmr.msra.gmra.mxu3 %vm227_vm2, %v309_v45 }
 0x232   :  { %v342_v47 = vpop.f32.mrf.mxu3 }
 0x233   :  { %v343_v48 = vadd.f32 %v404_v46, %v342_v47 }
 0x235   :  { %345 = vst [vmem:[#allocation15] sm:$0x3] %v343_v48 }
 0x236   :  { %367 = dma.vmem_to_hbm [thread:$0]  %s363_s0, 32, %s365_s23, [#allocation16]  }
 0x237   :  { %629 = dma.done.wait [#allocation4], 32  }
 0x238   :  { %630 = vsyncadd [#allocation4], 4294967264 }
 0x239   :  { %631 = dma.done.wait [#allocation16], 32  }
 0x23a   :  { %632 = vsyncadd [#allocation16], 4294967264 }
 0x23b   :  { %376 = vsyncpa [#allocation3], 1 }
 0x23c   :  { %377 = vsyncpa [#allocation6], 1 }
 0x23d   :  { %378 = vsyncpa [#allocation9], 1 }
 0x23e   :  { %379 = vsyncpa [#allocation12], 1 }
 0x23f   :  { %380 = vsyncpa [#allocation4], 1 }
 0x240   :  { %381 = vsyncpa [#allocation16], 1 }

</bundles_post_ra>
